<compile_context>
chip_gen: v5e
topology: v5e:2x2
jax: 0.10.0
libtpu: 0.0.40
codegen_flags: <defaults>
</compile_context>

<pallas_src>
import math

import jax
import jax.numpy as jnp
from jax import lax
from jax.experimental import pallas as pl
from jax.experimental.pallas import tpu as pltpu


def _round_up(x, m):
    return ((x + m - 1) // m) * m


def _linear_kernel(x_ref, w_ref, b_ref, o_ref):
    # x_ref: (TB, F) bf16   w_ref: (Cp, F) bf16   b_ref: (1, Cp) f32
    # o_ref: (TB, Cp) f32
    # Contract x's feature dim with w's feature dim directly (PyTorch (C, F)
    # layout); the MXU consumes the transposed operand natively.
    acc = lax.dot_general(
        x_ref[...], w_ref[...],
        dimension_numbers=(((1,), (1,)), ((), ())),
        preferred_element_type=jnp.float32)
    o_ref[...] = (acc + b_ref[...]).astype(o_ref.dtype)


def logreg_forward(seq, weight, bias, *, block_b=512):
    """seq: (B, ft_in) f32; weight: (nb_classes, ft_in) f32 (PyTorch layout);
    bias: (nb_classes,) f32.  Returns (B, nb_classes) f32 = seq @ W.T + b."""
    B, F = seq.shape
    C = weight.shape[0]

    # Lane-dense output: pad class dim to a multiple of 128.
    Cp = _round_up(max(C, 128), 128)

    # Batch tile: multiple of 8 sublanes, capped by block_b.
    TB = min(_round_up(B, 8), _round_up(block_b, 8))
    Bp = _round_up(B, TB)
    n_tiles = Bp // TB

    # bf16 operands for the MXU, f32 accumulation.
    x = seq.astype(jnp.bfloat16)
    if Bp != B:
        x = jnp.pad(x, ((0, Bp - B), (0, 0)))
    w = weight.astype(jnp.bfloat16)
    b2d = bias.reshape(1, C).astype(jnp.float32)
    if Cp != C:
        w = jnp.pad(w, ((0, Cp - C), (0, 0)))
        b2d = jnp.pad(b2d, ((0, 0), (0, Cp - C)))

    # VMEM budget: double-buffered x/out tiles + resident weight/bias.
    vmem_bytes = (2 * TB * F * 2        # x tiles (bf16)
                  + 2 * Cp * F * 2      # weight (bf16)
                  + 2 * Cp * 4          # bias (f32)
                  + 2 * TB * Cp * 4)    # out tiles (f32)
    vmem_limit = int(min(max(vmem_bytes + (4 << 20), 16 << 20), 100 << 20))

    out = pl.pallas_call(
        _linear_kernel,
        out_shape=jax.ShapeDtypeStruct((Bp, Cp), jnp.float32),
        grid_spec=pl.GridSpec(
            grid=(n_tiles,),
            in_specs=[
                pl.BlockSpec((TB, F), lambda i: (i, 0)),   # x: tiled over batch
                pl.BlockSpec((Cp, F), lambda i: (0, 0)),   # weight: resident
                pl.BlockSpec((1, Cp), lambda i: (0, 0)),   # bias:   resident
            ],
            out_specs=pl.BlockSpec((TB, Cp), lambda i: (i, 0)),
        ),
        compiler_params=pltpu.CompilerParams(
            dimension_semantics=("parallel",),  # shard batch tiles across TCs (v7x)
            vmem_limit_bytes=vmem_limit,
        ),
    )(x, w, b2d)

    return out[:B, :C]


def init_logreg_params(key, ft_in, nb_classes):
    # Mirrors torch.nn.init.xavier_uniform_ on weight of shape
    # (nb_classes, ft_in) and bias filled with 0.0.
    limit = math.sqrt(6.0 / (ft_in + nb_classes))
    weight = jax.random.uniform(
        key, (nb_classes, ft_in), minval=-limit, maxval=limit, dtype=jnp.float32)
    bias = jnp.zeros((nb_classes,), dtype=jnp.float32)
    return weight, bias


if __name__ == "__main__":
    key = jax.random.PRNGKey(0)
    k_w, k_x = jax.random.split(key)

    batch, ft_in, nb_classes = 128, 32, 16
    weight, bias = init_logreg_params(k_w, ft_in, nb_classes)
    seq = jax.random.normal(k_x, (batch, ft_in), dtype=jnp.float32)

    # block_b=64 -> two batch tiles, exercising the pipelined grid.
    out = logreg_forward(seq, weight, bias, block_b=64)
    out = jax.block_until_ready(out)

    # Reference in plain JAX (f32).  bf16 MXU operands => relaxed tolerance.
    ref = seq @ weight.T + bias
    assert out.shape == (batch, nb_classes)
    assert jnp.allclose(out, ref, atol=5e-2, rtol=5e-2), float(
        jnp.max(jnp.abs(out - ref)))
    print("KERNEL_OK")
</pallas_src>

<mosaic_0001>
module attributes {stable_mosaic.version = 11 : i64} {
  func.func @_linear_kernel(%arg0: i32, %arg1: memref<64x32xbf16, #tpu.memory_space<vmem>>, %arg2: memref<128x32xbf16, #tpu.memory_space<vmem>>, %arg3: memref<1x128xf32, #tpu.memory_space<vmem>>, %arg4: memref<64x128xf32, #tpu.memory_space<vmem>>) attributes {dimension_semantics = [#tpu.dimension_semantics<parallel>], iteration_bounds = array<i64: 2>, scalar_prefetch = 0 : i64, scratch_operands = 0 : i64, tpu.core_type = #tpu.core_type<tc>, window_params = [{transform_indices = @transform_0, window_bounds = array<i64: 64, 32>}, {pipeline_mode = #tpu.pipeline_mode<synchronous>, transform_indices = @transform_1, window_bounds = array<i64: 128, 32>}, {pipeline_mode = #tpu.pipeline_mode<synchronous>, transform_indices = @transform_2, window_bounds = array<i64: 1, 128>}, {transform_indices = @transform_3, window_bounds = array<i64: 64, 128>}]} {
    %c0 = arith.constant 0 : index
    %c0_0 = arith.constant 0 : index
    %0 = vector.load %arg1[%c0, %c0_0] : memref<64x32xbf16, #tpu.memory_space<vmem>>, vector<64x32xbf16>
    %c0_1 = arith.constant 0 : index
    %c0_2 = arith.constant 0 : index
    %1 = vector.load %arg2[%c0_1, %c0_2] : memref<128x32xbf16, #tpu.memory_space<vmem>>, vector<128x32xbf16>
    %cst = arith.constant dense<0.000000e+00> : vector<64x128xf32>
    %2 = tpu.matmul %0, %1, %cst {dimension_numbers = #tpu.dot_dimension_numbers<[1], [1], [0], [0], [0, 0, 1, 0], [], []>} : vector<64x32xbf16>, vector<128x32xbf16>, vector<64x128xf32> -> vector<64x128xf32>
    %c0_3 = arith.constant 0 : index
    %c0_4 = arith.constant 0 : index
    %3 = vector.load %arg3[%c0_3, %c0_4] : memref<1x128xf32, #tpu.memory_space<vmem>>, vector<1x128xf32>
    %4 = vector.broadcast %3 : vector<1x128xf32> to vector<64x128xf32>
    %5 = arith.addf %2, %4 : vector<64x128xf32>
    %c0_5 = arith.constant 0 : index
    %c0_6 = arith.constant 0 : index
    %6 = vector.load %arg4[%c0_5, %c0_6] : memref<64x128xf32, #tpu.memory_space<vmem>>, vector<64x128xf32>
    tpu.vector_store %arg4[%c0_5, %c0_6], %5 {strides = array<i32>} : memref<64x128xf32, #tpu.memory_space<vmem>>, vector<64x128xf32>,
    return
  }
  func.func @transform_0(%arg0: i32) -> (i32, i32) {
    %c0_i32 = arith.constant 0 : i32
    %c0_i32_0 = arith.constant 0 : i32
    return %arg0, %c0_i32 : i32, i32
  }
  func.func @transform_1(%arg0: i32) -> (i32, i32) {
    %c0_i32 = arith.constant 0 : i32
    %c0_i32_0 = arith.constant 0 : i32
    %c0_i32_1 = arith.constant 0 : i32
    return %c0_i32, %c0_i32_0 : i32, i32
  }
  func.func @transform_2(%arg0: i32) -> (i32, i32) {
    %c0_i32 = arith.constant 0 : i32
    %c0_i32_0 = arith.constant 0 : i32
    %c0_i32_1 = arith.constant 0 : i32
    return %c0_i32, %c0_i32_0 : i32, i32
  }
  func.func @transform_3(%arg0: i32) -> (i32, i32) {
    %c0_i32 = arith.constant 0 : i32
    %c0_i32_0 = arith.constant 0 : i32
    return %arg0, %c0_i32 : i32, i32
  }
}

</mosaic_0001>

<bundles_post_ra>
// kernel: tpu_custom_call.1
= control target key start
LH: loop header
LB: loop body
LE: loop exit
PB: predicated region body
PF: predicated region fallthrough
CT: control target
= control target key end

     0   :  { %8 = vsyncpa [#allocation3], 0  ;;  %s768_s0 = inlined_call_operand.vmem [shape: bf16[128,32], index: 0, kind: input, shape index: {}]   ;;  %s769_s1 = inlined_call_operand.vmem [shape: bf16[128,32], index: 1, kind: input, shape index: {}]   ;;  %s770_s2 = inlined_call_operand.vmem [shape: f32[1,128], index: 2, kind: input, shape index: {}]   ;;  %s771_s3 = inlined_call_operand.hbm [shape: f32[128,128], index: 3, kind: output, shape index: {}]  }
   0x1   :  { %10 = vsyncpa [#allocation3 + $0x1], 0  ;;  %s641_s12 = smov 0   ;;  %s643_s13 = smov 0  }
   0x2   :  { %s645_s14 = smov 0   ;;  %s647_s15 = smov 0  }
   0x3 LB: > { %s662_s16 = sadd.s32 4294967295, %s617_s15   ;;  %s412_s17 = sadd.s32 4294967294, %s617_s15   ;;  %s617_s15 = sphi %s647_s15, %s777_s15   ;;  %s613_s14 = sphi %s645_s14, %s776_s14   ;;  %s609_s13 = sphi %s643_s13, %s775_s13   ;;  %s605_s12 = sphi %s641_s12, %s774_s12  }
   0x4   : > { %s666_s18 = sadd.s32 1, %s617_s15   ;;  %s91_s19 = sadd.s32 1, %s613_s14 }
   0x5   : > { %s88_s20 = ssub.s32 %s617_s15, %s666_s18  ;;  %p101_p0 = scmp.ne.s32.totalorder %s613_s14, %s609_s13 }
   0x6   : > { %p89_p1 = scmp.eq.s32.totalorder %s88_s20, 0  ;;  %p102_p2 = scmp.eq.s32.totalorder %s662_s16, 1 }
   0x7   : > { %p107_p3 = scmp.ne.s32.totalorder %s609_s13, %s605_s12  ;;  %p108_p4 = scmp.eq.s32.totalorder %s412_s17, 1 }
   0x8   : > { %s677_s21 = scalar_select %p89_p1, %s613_s14, %s91_s19  }
   0x9   : > { %p679_p5 = por %p102_p2, %p101_p0  ;;  %p683_p6 = por %p108_p4, %p107_p3 }
   0xa   : > { %p415_p7 = scmp.ge.s32.totalorder %s617_s15, 1  ;;  %p141_p8 = scmp.lt.s32.totalorder %s617_s15, 3 }
   0xc   : > { %p142_p9 = pnand %p415_p7, %p141_p8 }
   0xd   : > { %s417_s11 = sshll.u32 (!%p142_p9), %s662_s16, 3  ;;  %s162_s27 = sand.u32 (!%p142_p9), 1, %s609_s13  }
   0xe   : > { %145 = sbr.rel (%p142_p9) target bundleno = 232 (0xe8), region = 32  ;;  %p166_p10 = scmp.lt.s32.totalorder (!%p142_p9), %s417_s11, 15 }
   0xf   : > { %s416_s28 = sshll.u32 (!%p142_p9), %s162_s27, 6  ;;  %s488_s5 = sshll.u32 (!%p142_p9), %s662_s16, 6 }
  0x10   : > { %s164_s4 = scalar_lea.vmem (!%p142_p9), [#allocation2], %s416_s28  ;;  %s346_s8 = scalar_lea.hbm (!%p142_p9), %s771_s3, %s488_s5 }
  0x11   : > { %s347_s9 = sshll.u32 (!%p142_p9), %s164_s4, 4  ;;  %s349_s10 = sshll.u32 (!%p142_p9), %s346_s8, 4  ;;  %s348_s9 = int_to_ptr.vmem [resolvable:$true] %s347_s9  ;;  %s350_s10 = int_to_ptr.hbm [resolvable:$true] %s349_s10 }
  0x12   : > { %s335_s16 = scalar_lea.sflag (!%p142_p9), [#allocation3], %s162_s27  ;;  %s575_s24 = scalar_lea.hbm (!%p142_p9), %s771_s3, 128 }
  0x13   : > { %v487_v0 = vld [vmem:[%s769_s1 + $0x38] sm:$0xff]  ;;  %vm260_vm0 = vcmask 261120   ;;  %v486_v2 = vld [vmem:[%s769_s1 + $0x30] sm:$0xff]  ;;  %v485_v4 = vld [vmem:[%s769_s1 + $0x28] sm:$0xff]  ;;  %s779_s11 = smov (!%p166_p10, %s417_s11), 15 }
  0x14   : > { %v295_v1 = vsel %vm260_vm0, %v487_v0, 0  ;;  %v292_v3 = vsel %vm260_vm0, %v486_v2, 0  ;;  %v289_v5 = vsel %vm260_vm0, %v485_v4, 0  ;;  %v484_v6 = vld [vmem:[%s769_s1 + $0x20] sm:$0xff]  ;;  %v483_v8 = vld [vmem:[%s769_s1 + $0x18] sm:$0xff]  ;;  %v482_v10 = vld [vmem:[%s769_s1 + $0x10] sm:$0xff] }
  0x15   : > { %297 = vmatpush.bf16.xpose.msra.mxu0 %v295_v1  ;;  %489 = vmatpush.bf16.xpose.msra.mxu1 %v295_v1  ;;  %v286_v7 = vsel %vm260_vm0, %v484_v6, 0  ;;  %v283_v9 = vsel %vm260_vm0, %v483_v8, 0  ;;  %v280_v11 = vsel %vm260_vm0, %v482_v10, 0  ;;  %v481_v12 = vld [vmem:[%s769_s1 + $0x8] sm:$0xff]  ;;  %v480_v14 = vld [vmem:[%s769_s1] sm:$0xff]  ;;  %s418_s20 = sshll.u32 %s779_s11, 2 }
  0x16   : > { %490 = vmatpush.bf16.xpose.msra.mxu2 %v295_v1  ;;  %491 = vmatpush.bf16.xpose.msra.mxu3 %v295_v1  ;;  %v277_v13 = vsel %vm260_vm0, %v481_v12, 0  ;;  %v274_v15 = vsel %vm260_vm0, %v480_v14, 0  ;;  %s169_s26 = scalar_lea.vmem %s768_s0, %s418_s20  ;;  %v554_v20 = vld [vmem:[%s770_s2] ss:$0 sm:$0xff]  ;;  %s569_s11 = sshra.s32 %s350_s10, 4  ;;  %s570_s11 = int_to_ptr.hbm [resolvable:$true] %s569_s11 }
  0x17   : > { %v476_v16 = vld [vmem:[%s169_s26] sm:$0xff]  ;;  %v477_v17 = vld [vmem:[%s169_s26 + $0x8] sm:$0xff]  ;;  %v478_v18 = vld [vmem:[%s169_s26 + $0x10] sm:$0xff]  ;;  %s571_s17 = scalar_lea.hbm %s570_s11, 64  ;;  %p576_p0 = scmp.lt.s32.totalorder %s570_s11, %s771_s3 }
  0x18   : > { %v479_v19 = vld [vmem:[%s169_s26 + $0x18] sm:$0xff]  ;;  %p572_p11 = scmp.ne.s32.totalorder %s570_s11, %s571_s17  ;;  %p577_p1 = scmp.lt.s32.totalorder %s575_s24, %s571_s17 }
  0x1a   : > { %p573_p12 = pnand %p572_p11, %p679_p5  ;;  %p578_p2 = por %p577_p1, %p576_p0 }
  0x1c   : > { %p574_p13 = pneg %p573_p12 }
  0x1d   : > { %298 = vmatpush.bf16.xpose.msra.mxu0 %v292_v3  ;;  %492 = vmatpush.bf16.xpose.msra.mxu1 %v292_v3 }
  0x1e   : > { %493 = vmatpush.bf16.xpose.msra.mxu2 %v292_v3  ;;  %494 = vmatpush.bf16.xpose.msra.mxu3 %v292_v3  ;;  %p579_p3 = pnand %p578_p2, %p574_p13 }
  0x25   : > { %299 = vmatpush.bf16.xpose.msra.mxu0 %v289_v5  ;;  %495 = vmatpush.bf16.xpose.msra.mxu1 %v289_v5 }
  0x26   : > { %496 = vmatpush.bf16.xpose.msra.mxu2 %v289_v5  ;;  %497 = vmatpush.bf16.xpose.msra.mxu3 %v289_v5 }
  0x2d   : > { %300 = vmatpush.bf16.xpose.msra.mxu0 %v286_v7  ;;  %498 = vmatpush.bf16.xpose.msra.mxu1 %v286_v7 }
  0x2e   : > { %499 = vmatpush.bf16.xpose.msra.mxu2 %v286_v7  ;;  %500 = vmatpush.bf16.xpose.msra.mxu3 %v286_v7 }
  0x35   : > { %301 = vmatpush.bf16.xpose.msra.mxu0 %v283_v9  ;;  %501 = vmatpush.bf16.xpose.msra.mxu1 %v283_v9 }
  0x36   : > { %502 = vmatpush.bf16.xpose.msra.mxu2 %v283_v9  ;;  %503 = vmatpush.bf16.xpose.msra.mxu3 %v283_v9 }
  0x3d   : > { %302 = vmatpush.bf16.xpose.msra.mxu0 %v280_v11  ;;  %504 = vmatpush.bf16.xpose.msra.mxu1 %v280_v11 }
  0x3e   : > { %505 = vmatpush.bf16.xpose.msra.mxu2 %v280_v11  ;;  %506 = vmatpush.bf16.xpose.msra.mxu3 %v280_v11 }
  0x45   : > { %303 = vmatpush.bf16.xpose.msra.mxu0 %v277_v13  ;;  %507 = vmatpush.bf16.xpose.msra.mxu1 %v277_v13 }
  0x46   : > { %508 = vmatpush.bf16.xpose.msra.mxu2 %v277_v13  ;;  %509 = vmatpush.bf16.xpose.msra.mxu3 %v277_v13 }
  0x4d   : > { %304 = vmatpush.bf16.xpose.msra.mxu0 %v274_v15  ;;  %510 = vmatpush.bf16.xpose.msra.mxu1 %v274_v15 }
  0x4e   : > { %511 = vmatpush.bf16.xpose.msra.mxu2 %v274_v15  ;;  %512 = vmatpush.bf16.xpose.msra.mxu3 %v274_v15 }
  0x54   : > { %467 = vmatmul.msk.bf16.vlgmr.msra.gmra.mxu0 %vm260_vm0, %v476_v16  ;;  %468 = vmatmul.msk.bf16.vlgmr.msra.gmra.mxu1 %vm260_vm0, %v477_v17 }
  0x55   : > { %469 = vmatmul.msk.bf16.vlgmr.msra.gmra.mxu2 %vm260_vm0, %v478_v18  ;;  %470 = vmatmul.msk.bf16.vlgmr.msra.gmra.mxu3 %vm260_vm0, %v479_v19 }
  0xd1   : > { %v306_v21 = vpop.f32.mrf.mxu0  ;;  %v311_v22 = vpop.f32.mrf.mxu1 }
  0xd2   : > { %v307_v23 = vadd.f32 %v554_v20, %v306_v21  ;;  %v312_v24 = vadd.f32 %v554_v20, %v311_v22 }
  0xd4   : > { %326 = vst [vmem:[%s164_s4] sm:$0xff] %v307_v23 }
  0xd5   : > { %328 = vst [vmem:[%s164_s4 + $0x10] sm:$0xff] %v312_v24 }
  0xd8   : > { %v316_v25 = vpop.f32.mrf.mxu2  ;;  %v321_v26 = vpop.f32.mrf.mxu3 }
  0xd9   : > { %v317_v27 = vadd.f32 %v554_v20, %v316_v25  ;;  %v322_v28 = vadd.f32 %v554_v20, %v321_v26  ;;  %v308_v29 = vpop.f32.mrf.mxu0  ;;  %v313_v30 = vpop.f32.mrf.mxu1 }
  0xda   : > { %v309_v31 = vadd.f32 %v554_v20, %v308_v29  ;;  %v314_v32 = vadd.f32 %v554_v20, %v313_v30 }
  0xdb   : > { %330 = vst [vmem:[%s164_s4 + $0x20] sm:$0xff] %v317_v27 }
  0xdc   : > { %332 = vst [vmem:[%s164_s4 + $0x30] sm:$0xff] %v322_v28 }
  0xdd   : > { %327 = vst [vmem:[%s164_s4 + $0x8] sm:$0xff] %v309_v31 }
  0xde   : > { %329 = vst [vmem:[%s164_s4 + $0x18] sm:$0xff] %v314_v32 }
  0xe0   : > { %v318_v33 = vpop.f32.mrf.mxu2  ;;  %v323_v34 = vpop.f32.mrf.mxu3 }
  0xe1   : > { %v319_v35 = vadd.f32 %v554_v20, %v318_v33  ;;  %v324_v36 = vadd.f32 %v554_v20, %v323_v34 }
  0xe3   : > { %331 = vst [vmem:[%s164_s4 + $0x28] sm:$0xff] %v319_v35 }
  0xe4   : > { %333 = vst [vmem:[%s164_s4 + $0x38] sm:$0xff] %v324_v36 }
  0xe5   : > { %582 = shalt.err (!%p579_p3)
}
  0xe6   : > { %s619_s27 = smov 128   ;;  %s620_s28 = smov 8  }
  0xe7   : > { %513 = dma.vmem_to_hbm [thread:$0]  (%p679_p5), %s348_s9, 1024, %s350_s10, %s335_s16, %s619_s27, %s619_s27, %s620_s28  }
  0xe8 PF: > { %p519_p4 = scmp.ge.s32.totalorder %s617_s15, 2  ;;  %s364_s29 = sand.u32 1, %s605_s12  }
  0xe9   : > { %s365_s30 = scalar_lea.sflag [#allocation3], %s364_s29 }
  0xea   : > { %p516_p7 = pnand %p519_p4, %p683_p6 }
  0xec   : > { %p517_p8 = pneg %p516_p7 }
  0xee   : > { %600 = dma.done.wait (%p517_p8), %s365_s30, 1024  }
  0xef   : > { %602 = vsyncadd (%p517_p8), %s365_s30, 4294966272  ;;  %p13_p9 = scmp.ge.s32.totalorder %s666_s18, 4   ;;  %s774_s12 = smov %s609_s13 }
  0xf0   : > { %s775_s13 = smov %s613_s14  ;;  %s776_s14 = smov %s677_s21 }
  0xf1   : > { %s777_s15 = smov %s666_s18  ;;  %15 = sbr.rel (!%p13_p9) target bundleno = 3 (0x3), region = 67 }
  0xf6   :  { %371 = vsyncpa [#allocation3], 1 }
  0xf7   :  { %373 = vsyncpa [#allocation3 + $0x1], 1 }

</bundles_post_ra>
